<compile_context>
chip_gen: v5e
topology: v5e:2x2
jax: 0.10.0
libtpu: 0.0.40
codegen_flags: <defaults>
</compile_context>

<pallas_src>
import functools
from itertools import combinations

import jax
import jax.numpy as jnp
from jax.experimental import pallas as pl
from jax.experimental.pallas import tpu as pltpu


def _round_up(x, m):
    return (x + m - 1) // m * m


def _hoi_kernel(ids_ref, tbl_ref, out_ref, *, team_size, n_hero, hidden_dim):
    """sigmoid(FM(team_A) - FM(team_B)) for one tile of matches.

    ids_ref: (2*T, tile_n) int32  -- team-A slots then team-B slots; matches on lanes.
    tbl_ref: (D+1, n_hero) f32    -- row 0 = skill - 0.5*||E||^2, rows 1..D = E^T.
    out_ref: (1, tile_n)  f32     -- lane-dense probabilities.
    """
    tile_n = out_ref.shape[1]
    # Hoisted once: hero-id iota along the sublane axis, reused by every slot compare.
    hero_iota = jax.lax.broadcasted_iota(jnp.int32, (n_hero, tile_n), 0)
    tbl = tbl_ref[...]                                            # (D+1, n_hero)

    def team_fm(slot0):
        # Per-match hero-count matrix via one-hot accumulation (in-kernel "gather").
        # Accumulate in int32 (cheap VPU selects/adds), cast to f32 once for the MXU.
        counts = jnp.zeros((n_hero, tile_n), jnp.int32)
        for t in range(team_size):                                # static unroll (T small)
            ids_row = ids_ref[slot0 + t:slot0 + t + 1, :]         # (1, tile_n) static sublane slice
            counts = counts + (ids_row == hero_iota).astype(jnp.int32)
        countsf = counts.astype(jnp.float32)
        # (D+1, n_hero) @ (n_hero, tile_n) -> (D+1, tile_n) on the MXU.
        g = jnp.dot(tbl, countsf, preferred_element_type=jnp.float32)
        linear = g[0:1, :]                                        # skill_sum - 0.5*sum||e_t||^2
        m = g[1:, :]                                              # sum_t e_t, (D, tile_n)
        quad = 0.5 * jnp.sum(m * m, axis=0, keepdims=True)        # (1, tile_n), XLU reduce
        return linear + quad

    diff = team_fm(0) - team_fm(team_size)                        # FM_A - FM_B
    out_ref[...] = 1.0 / (1.0 + jnp.exp(-diff))                   # sigmoid (EUP)


def hoi_forward(data, skill_table, emb_table, *, team_size, tile_n=None):
    """data: (N, 2*T) int; skill_table: (n_hero, 1); emb_table: (n_hero, D)."""
    n_match = data.shape[0]
    n_hero, hidden_dim = emb_table.shape
    assert data.shape[1] == 2 * team_size

    if tile_n is None:
        # Lane-dense tiles, multiple of 128.  Favor large tiles (amortize the
        # ~0.35us/step pipeline overhead) but keep the (n_hero, tile_n) f32
        # one-hot intermediate around <= 2 MiB so register/VMEM pressure stays low.
        cap = min(4096, max(512, _round_up((2 << 20) // max(4 * n_hero, 1), 128)))
        tile_n = min(cap, _round_up(max(n_match, 1), 128))
    n_pad = _round_up(n_match, tile_n)
    grid = (n_pad // tile_n,)

    # Layout plumbing (cheap): pad N, transpose so matches sit on the lane axis.
    ids = data.astype(jnp.int32)
    if n_pad != n_match:
        ids = jnp.pad(ids, ((0, n_pad - n_match), (0, 0)))        # pad rows use hero id 0
    ids_t = ids.T                                                 # (2*T, n_pad)

    # Combined FM table: row 0 carries the linear + "minus self-interaction" term.
    e32 = emb_table.astype(jnp.float32)
    sq = jnp.sum(e32 * e32, axis=1, keepdims=True)                # (n_hero, 1)
    lin = skill_table.astype(jnp.float32) - 0.5 * sq              # (n_hero, 1)
    tbl = jnp.concatenate([lin, e32], axis=1).T                   # (D+1, n_hero)

    kernel = functools.partial(
        _hoi_kernel, team_size=team_size, n_hero=n_hero, hidden_dim=hidden_dim)

    cost = pl.CostEstimate(
        flops=int(n_pad) * 2 * (2 * (hidden_dim + 1) * n_hero
                                + 3 * hidden_dim + team_size * n_hero),
        transcendentals=int(n_pad),
        bytes_accessed=int(n_pad) * (2 * team_size * 4 + 4)
                       + (hidden_dim + 1) * n_hero * 4,
    )

    out = pl.pallas_call(
        kernel,
        out_shape=jax.ShapeDtypeStruct((1, n_pad), jnp.float32),
        grid=grid,
        in_specs=[
            pl.BlockSpec((2 * team_size, tile_n), lambda i: (0, i)),   # ids tile (lanes = matches)
            pl.BlockSpec((hidden_dim + 1, n_hero), lambda i: (0, 0)),  # full tiny table, resident
        ],
        out_specs=pl.BlockSpec((1, tile_n), lambda i: (0, i)),         # lane-dense output slab
        compiler_params=pltpu.CompilerParams(
            dimension_semantics=("parallel",)),                        # megacore split over N
        cost_estimate=cost,
    )(ids_t, tbl)

    return out[0, :n_match]                                            # (N,) probabilities


def hoi_reference(data, skill_table, emb_table, *, team_size):
    """Pure-JAX reference mirroring the PyTorch HOI.forward."""
    idx1, idx2 = zip(*combinations(range(team_size), 2))
    idx1 = jnp.array(idx1)
    idx2 = jnp.array(idx2)

    def fm(team):
        hero_skill = jnp.take(skill_table, team, axis=0).reshape(team.shape[0], -1)
        team_skill = hero_skill.sum(axis=1, keepdims=True)
        a = jnp.take(emb_table, team[:, idx1], axis=0)
        b = jnp.take(emb_table, team[:, idx2], axis=0)
        order2 = (a * b).sum(axis=(1, 2)).reshape(-1, 1)
        return team_skill + order2

    a_ability = fm(data[:, :team_size])
    b_ability = fm(data[:, team_size:])
    return jax.nn.sigmoid(a_ability - b_ability).reshape(-1)


if __name__ == "__main__":
    n_hero = 20
    team_size = 5
    hidden_dim = 10
    n_match = 8

    key = jax.random.PRNGKey(0)
    k_skill, k_emb, k_data = jax.random.split(key, 3)

    # Deterministic parameter init (nn.Embedding default ~ N(0, 1)).
    skill_table = jax.random.normal(k_skill, (n_hero, 1), dtype=jnp.float32)
    emb_table = jax.random.normal(k_emb, (n_hero, hidden_dim), dtype=jnp.float32)

    data = jax.random.randint(k_data, (n_match, 2 * team_size), 0, n_hero,
                              dtype=jnp.int32)

    probs = hoi_forward(data, skill_table, emb_table, team_size=team_size)
    probs = jax.block_until_ready(probs)

    ref = hoi_reference(data, skill_table, emb_table, team_size=team_size)
    assert probs.shape == (n_match,)
    assert jnp.allclose(probs, ref, atol=1e-5, rtol=1e-4)

    print("KERNEL_OK")
</pallas_src>

<mosaic_0001>
module attributes {stable_mosaic.version = 11 : i64} {
  func.func @_hoi_kernel(%arg0: i32, %arg1: memref<10x128xi32, #tpu.memory_space<vmem>>, %arg2: memref<11x20xf32, #tpu.memory_space<vmem>>, %arg3: memref<1x128xf32, #tpu.memory_space<vmem>>) attributes {dimension_semantics = [#tpu.dimension_semantics<parallel>], iteration_bounds = array<i64: 1>, scalar_prefetch = 0 : i64, scratch_operands = 0 : i64, tpu.core_type = #tpu.core_type<tc>, window_params = [{transform_indices = @transform_0, window_bounds = array<i64: 10, 128>}, {pipeline_mode = #tpu.pipeline_mode<synchronous>, transform_indices = @transform_1, window_bounds = array<i64: 11, 20>}, {transform_indices = @transform_2, window_bounds = array<i64: 1, 128>}]} {
    %0 = tpu.iota {dimensions = array<i32: 0>} : vector<20x128xi32>
    %c0 = arith.constant 0 : index
    %c0_0 = arith.constant 0 : index
    %1 = vector.load %arg2[%c0, %c0_0] : memref<11x20xf32, #tpu.memory_space<vmem>>, vector<11x20xf32>
    %c0_i32 = arith.constant 0 : i32
    %2 = vector.broadcast %c0_i32 : i32 to vector<20x128xi32>
    %c0_1 = arith.constant 0 : index
    %c0_2 = arith.constant 0 : index
    %3 = vector.load %arg1[%c0_1, %c0_2] : memref<10x128xi32, #tpu.memory_space<vmem>>, vector<1x128xi32>
    %4 = vector.broadcast %3 : vector<1x128xi32> to vector<20x128xi32>
    %5 = arith.cmpi eq, %4, %0 : vector<20x128xi32>
    %6 = arith.extui %5 : vector<20x128xi1> to vector<20x128xi32>
    %7 = arith.addi %2, %6 : vector<20x128xi32>
    %c1 = arith.constant 1 : index
    %c0_3 = arith.constant 0 : index
    %8 = vector.load %arg1[%c1, %c0_3] : memref<10x128xi32, #tpu.memory_space<vmem>>, vector<1x128xi32>
    %9 = vector.broadcast %8 : vector<1x128xi32> to vector<20x128xi32>
    %10 = arith.cmpi eq, %9, %0 : vector<20x128xi32>
    %11 = arith.extui %10 : vector<20x128xi1> to vector<20x128xi32>
    %12 = arith.addi %7, %11 : vector<20x128xi32>
    %c2 = arith.constant 2 : index
    %c0_4 = arith.constant 0 : index
    %13 = vector.load %arg1[%c2, %c0_4] : memref<10x128xi32, #tpu.memory_space<vmem>>, vector<1x128xi32>
    %14 = vector.broadcast %13 : vector<1x128xi32> to vector<20x128xi32>
    %15 = arith.cmpi eq, %14, %0 : vector<20x128xi32>
    %16 = arith.extui %15 : vector<20x128xi1> to vector<20x128xi32>
    %17 = arith.addi %12, %16 : vector<20x128xi32>
    %c3 = arith.constant 3 : index
    %c0_5 = arith.constant 0 : index
    %18 = vector.load %arg1[%c3, %c0_5] : memref<10x128xi32, #tpu.memory_space<vmem>>, vector<1x128xi32>
    %19 = vector.broadcast %18 : vector<1x128xi32> to vector<20x128xi32>
    %20 = arith.cmpi eq, %19, %0 : vector<20x128xi32>
    %21 = arith.extui %20 : vector<20x128xi1> to vector<20x128xi32>
    %22 = arith.addi %17, %21 : vector<20x128xi32>
    %c4 = arith.constant 4 : index
    %c0_6 = arith.constant 0 : index
    %23 = vector.load %arg1[%c4, %c0_6] : memref<10x128xi32, #tpu.memory_space<vmem>>, vector<1x128xi32>
    %24 = vector.broadcast %23 : vector<1x128xi32> to vector<20x128xi32>
    %25 = arith.cmpi eq, %24, %0 : vector<20x128xi32>
    %26 = arith.extui %25 : vector<20x128xi1> to vector<20x128xi32>
    %27 = arith.addi %22, %26 : vector<20x128xi32>
    %28 = arith.sitofp %27 : vector<20x128xi32> to vector<20x128xf32>
    %cst = arith.constant dense<0.000000e+00> : vector<11x128xf32>
    %29 = tpu.matmul %1, %28, %cst {dimension_numbers = #tpu.dot_dimension_numbers<[1], [0], [0], [1], [0, 0, 1, 1], [], []>} : vector<11x20xf32>, vector<20x128xf32>, vector<11x128xf32> -> vector<11x128xf32>
    %30 = vector.extract_strided_slice %29 {offsets = [0, 0], sizes = [1, 128], strides = [1, 1]} : vector<11x128xf32> to vector<1x128xf32>
    %31 = vector.extract_strided_slice %29 {offsets = [1, 0], sizes = [10, 128], strides = [1, 1]} : vector<11x128xf32> to vector<10x128xf32>
    %32 = arith.mulf %31, %31 : vector<10x128xf32>
    %cst_7 = arith.constant dense<0.000000e+00> : vector<128xf32>
    %33 = vector.multi_reduction <add>, %32, %cst_7 [0] : vector<10x128xf32> to vector<128xf32>
    %34 = vector.shape_cast %33 : vector<128xf32> to vector<1x128xf32>
    %cst_8 = arith.constant 5.000000e-01 : f32
    %35 = vector.broadcast %cst_8 : f32 to vector<1x128xf32>
    %36 = arith.mulf %35, %34 : vector<1x128xf32>
    %37 = arith.addf %30, %36 : vector<1x128xf32>
    %c0_i32_9 = arith.constant 0 : i32
    %38 = vector.broadcast %c0_i32_9 : i32 to vector<20x128xi32>
    %c5 = arith.constant 5 : index
    %c0_10 = arith.constant 0 : index
    %39 = vector.load %arg1[%c5, %c0_10] : memref<10x128xi32, #tpu.memory_space<vmem>>, vector<1x128xi32>
    %40 = vector.broadcast %39 : vector<1x128xi32> to vector<20x128xi32>
    %41 = arith.cmpi eq, %40, %0 : vector<20x128xi32>
    %42 = arith.extui %41 : vector<20x128xi1> to vector<20x128xi32>
    %43 = arith.addi %38, %42 : vector<20x128xi32>
    %c6 = arith.constant 6 : index
    %c0_11 = arith.constant 0 : index
    %44 = vector.load %arg1[%c6, %c0_11] : memref<10x128xi32, #tpu.memory_space<vmem>>, vector<1x128xi32>
    %45 = vector.broadcast %44 : vector<1x128xi32> to vector<20x128xi32>
    %46 = arith.cmpi eq, %45, %0 : vector<20x128xi32>
    %47 = arith.extui %46 : vector<20x128xi1> to vector<20x128xi32>
    %48 = arith.addi %43, %47 : vector<20x128xi32>
    %c7 = arith.constant 7 : index
    %c0_12 = arith.constant 0 : index
    %49 = vector.load %arg1[%c7, %c0_12] : memref<10x128xi32, #tpu.memory_space<vmem>>, vector<1x128xi32>
    %50 = vector.broadcast %49 : vector<1x128xi32> to vector<20x128xi32>
    %51 = arith.cmpi eq, %50, %0 : vector<20x128xi32>
    %52 = arith.extui %51 : vector<20x128xi1> to vector<20x128xi32>
    %53 = arith.addi %48, %52 : vector<20x128xi32>
    %c8 = arith.constant 8 : index
    %c0_13 = arith.constant 0 : index
    %54 = vector.load %arg1[%c8, %c0_13] : memref<10x128xi32, #tpu.memory_space<vmem>>, vector<1x128xi32>
    %55 = vector.broadcast %54 : vector<1x128xi32> to vector<20x128xi32>
    %56 = arith.cmpi eq, %55, %0 : vector<20x128xi32>
    %57 = arith.extui %56 : vector<20x128xi1> to vector<20x128xi32>
    %58 = arith.addi %53, %57 : vector<20x128xi32>
    %c9 = arith.constant 9 : index
    %c0_14 = arith.constant 0 : index
    %59 = vector.load %arg1[%c9, %c0_14] : memref<10x128xi32, #tpu.memory_space<vmem>>, vector<1x128xi32>
    %60 = vector.broadcast %59 : vector<1x128xi32> to vector<20x128xi32>
    %61 = arith.cmpi eq, %60, %0 : vector<20x128xi32>
    %62 = arith.extui %61 : vector<20x128xi1> to vector<20x128xi32>
    %63 = arith.addi %58, %62 : vector<20x128xi32>
    %64 = arith.sitofp %63 : vector<20x128xi32> to vector<20x128xf32>
    %cst_15 = arith.constant dense<0.000000e+00> : vector<11x128xf32>
    %65 = tpu.matmul %1, %64, %cst_15 {dimension_numbers = #tpu.dot_dimension_numbers<[1], [0], [0], [1], [0, 0, 1, 1], [], []>} : vector<11x20xf32>, vector<20x128xf32>, vector<11x128xf32> -> vector<11x128xf32>
    %66 = vector.extract_strided_slice %65 {offsets = [0, 0], sizes = [1, 128], strides = [1, 1]} : vector<11x128xf32> to vector<1x128xf32>
    %67 = vector.extract_strided_slice %65 {offsets = [1, 0], sizes = [10, 128], strides = [1, 1]} : vector<11x128xf32> to vector<10x128xf32>
    %68 = arith.mulf %67, %67 : vector<10x128xf32>
    %cst_16 = arith.constant dense<0.000000e+00> : vector<128xf32>
    %69 = vector.multi_reduction <add>, %68, %cst_16 [0] : vector<10x128xf32> to vector<128xf32>
    %70 = vector.shape_cast %69 : vector<128xf32> to vector<1x128xf32>
    %cst_17 = arith.constant 5.000000e-01 : f32
    %71 = vector.broadcast %cst_17 : f32 to vector<1x128xf32>
    %72 = arith.mulf %71, %70 : vector<1x128xf32>
    %73 = arith.addf %66, %72 : vector<1x128xf32>
    %74 = arith.subf %37, %73 : vector<1x128xf32>
    %cst_18 = arith.constant 0.000000e+00 : f32
    %75 = vector.broadcast %cst_18 : f32 to vector<1x128xf32>
    %76 = arith.subf %75, %74 : vector<1x128xf32>
    %77 = math.exp %76 : vector<1x128xf32>
    %cst_19 = arith.constant 1.000000e+00 : f32
    %78 = vector.broadcast %cst_19 : f32 to vector<1x128xf32>
    %79 = arith.addf %78, %77 : vector<1x128xf32>
    %cst_20 = arith.constant 1.000000e+00 : f32
    %80 = vector.broadcast %cst_20 : f32 to vector<1x128xf32>
    %81 = arith.divf %80, %79 : vector<1x128xf32>
    %c0_21 = arith.constant 0 : index
    %c0_22 = arith.constant 0 : index
    %82 = vector.load %arg3[%c0_21, %c0_22] : memref<1x128xf32, #tpu.memory_space<vmem>>, vector<1x128xf32>
    tpu.vector_store %arg3[%c0_21, %c0_22], %81 {strides = array<i32>} : memref<1x128xf32, #tpu.memory_space<vmem>>, vector<1x128xf32>,
    return
  }
  func.func @transform_0(%arg0: i32) -> (i32, i32) {
    %c0_i32 = arith.constant 0 : i32
    %c0_i32_0 = arith.constant 0 : i32
    return %c0_i32, %arg0 : i32, i32
  }
  func.func @transform_1(%arg0: i32) -> (i32, i32) {
    %c0_i32 = arith.constant 0 : i32
    %c0_i32_0 = arith.constant 0 : i32
    %c0_i32_1 = arith.constant 0 : i32
    return %c0_i32, %c0_i32_0 : i32, i32
  }
  func.func @transform_2(%arg0: i32) -> (i32, i32) {
    %c0_i32 = arith.constant 0 : i32
    %c0_i32_0 = arith.constant 0 : i32
    return %c0_i32, %arg0 : i32, i32
  }
}

</mosaic_0001>

<bundles_post_ra>
// kernel: tpu_custom_call.1
= control target key start
LH: loop header
LB: loop body
LE: loop exit
PB: predicated region body
PF: predicated region fallthrough
CT: control target
= control target key end

     0   :  { %7 = vsyncpa [#allocation3], 0  ;;  %s552_s0 = inlined_call_operand.hbm [shape: s32[10,128], index: 0, kind: input, shape index: {}]   ;;  %s553_s1 = inlined_call_operand.hbm [shape: f32[11,20], index: 1, kind: input, shape index: {}]   ;;  %s554_s2 = inlined_call_operand.hbm [shape: f32[1,128], index: 2, kind: output, shape index: {}]  }
   0x1   :  { %8 = vsyncpa [#allocation6], 0 }
   0x2   :  { %9 = vsyncpa [#allocation4], 0  ;;  %s14_s11 = sshll.u32 %s552_s0, 4  ;;  %s409_s12 = smov [#allocation2]   ;;  %s15_s11 = int_to_ptr.hbm [resolvable:$true] %s14_s11 }
   0x3   :  { %s16_s13 = sshll.u32 %s409_s12, 4  ;;  %s27_s16 = sshll.u32 %s553_s1, 4  ;;  %s17_s13 = int_to_ptr.vmem [resolvable:$true] %s16_s13  ;;  %s28_s16 = int_to_ptr.hbm [resolvable:$true] %s27_s16 }
   0x4   :  { %s410_s17 = smov 128   ;;  %s411_s18 = smov 8  }
   0x5   :  { %22 = dma.hbm_to_vmem [thread:$0]  %s15_s11, 256, %s17_s13, [#allocation3], %s410_s17, %s410_s17, %s411_s18  }
   0x6   :  { %s412_s19 = smov [#allocation5]  }
   0x7   :  { %s29_s20 = sshll.u32 %s412_s19, 4  ;;  %s30_s20 = int_to_ptr.vmem [resolvable:$true] %s29_s20 }
   0x8   :  { %35 = dma.hbm_to_vmem [thread:$0]  %s28_s16, 256, %s30_s20, [#allocation6], %s410_s17, %s410_s17, %s411_s18  }
   0x9   :  { %403 = dma.done.wait [#allocation3], 256  }
   0xa   :  { %404 = vsyncadd [#allocation3], 4294967040 }
   0xb   :  { %405 = dma.done.wait [#allocation6], 256  }
   0xc   :  { %406 = vsyncadd [#allocation6], 4294967040  ;;  %v44_v0 = vlaneseq  ;;  %v442_v4 = vld [vmem:[#allocation2] ss:$0 sm:$0xff]  ;;  %v444_v5 = vld [vmem:[#allocation2 + $0x1] ss:$0 sm:$0xff] }
   0xd   :  { %v446_v6 = vld [vmem:[#allocation2 + $0x2] ss:$0 sm:$0xff]  ;;  %v449_v7 = vld [vmem:[#allocation2 + $0x3] ss:$0 sm:$0xff]  ;;  %v413_v8 = vmov 0   ;;  %vm112_vm5 = vcmask 1043456  }
   0xe   :  { %v436_v1 = vshrl.u32 %v44_v0, 7  ;;  %v456_v10 = vld [vmem:[#allocation2 + $0x4] ss:$0 sm:$0xff]  ;;  %v462_v14 = vld [vmem:[#allocation2 + $0x5] ss:$0 sm:$0xff]  ;;  %s414_s0 = smov [#allocation7]  }
   0xf   :  { %v468_v17 = vld [vmem:[#allocation2 + $0x6] ss:$0 sm:$0xff]  ;;  %v475_v20 = vld [vmem:[#allocation2 + $0x7] ss:$0 sm:$0xff]  ;;  %v481_v24 = vld [vmem:[#allocation2 + $0x8] ss:$0 sm:$0xff] }
  0x10   :  { %v47_v2 = vadd.s32 16, %v436_v1  ;;  %v440_v3 = vadd.s32 8, %v436_v1  ;;  %vm52_vm8 = vcmp.eq.s32.totalorder %v442_v4, %v436_v1  ;;  %v486_v27 = vld [vmem:[#allocation2 + $0x9] ss:$0 sm:$0xff]  ;;  %s286_s1 = sshll.u32 %s414_s0, 4  ;;  %s288_s23 = sshll.u32 %s554_s2, 4  ;;  %s287_s1 = int_to_ptr.vmem [resolvable:$true] %s286_s1  ;;  %s289_s23 = int_to_ptr.hbm [resolvable:$true] %s288_s23 }
  0x11   :  { %v55_v50 = vsel %vm52_vm8, 1, %v413_v8  ;;  %vm93_vm8 = vcmp.eq.s32.totalorder %v456_v10, %v436_v1 }
  0x12   :  { %vm54_vm0 = vcmp.eq.s32.totalorder %v442_v4, %v47_v2  ;;  %vm53_vm1 = vcmp.eq.s32.totalorder %v442_v4, %v440_v3  ;;  %vm62_vm2 = vcmp.eq.s32.totalorder %v444_v5, %v47_v2  ;;  %vm73_vm3 = vcmp.eq.s32.totalorder %v446_v6, %v47_v2 }
  0x13   :  { %v57_v9 = vsel %vm54_vm0, 1, %v413_v8  ;;  %v56_v11 = vsel %vm53_vm1, 1, %v413_v8  ;;  %v65_v12 = vsel %vm62_vm2, 1, %v413_v8  ;;  %v76_v13 = vsel %vm73_vm3, 1, %v413_v8 }
  0x14   :  { %vm84_vm4 = vcmp.eq.s32.totalorder %v449_v7, %v47_v2  ;;  %vm61_vm6 = vcmp.eq.s32.totalorder %v444_v5, %v440_v3  ;;  %v68_v15 = vadd.s32 %v65_v12, %v57_v9  ;;  %vm95_vm7 = vcmp.eq.s32.totalorder %v456_v10, %v47_v2  ;;  %v48_v12 = vld [vmem:[#allocation5] sm:$0xff] }
  0x15   :  { %v87_v16 = vsel %vm84_vm4, 1, %v413_v8  ;;  %v64_v18 = vsel %vm61_vm6, 1, %v413_v8  ;;  %v98_v19 = vsel %vm95_vm7, 1, %v413_v8  ;;  %vm164_vm9 = vcmp.eq.s32.totalorder %v462_v14, %v47_v2 }
  0x16   :  { %v67_v21 = vadd.s32 %v64_v18, %v56_v11  ;;  %vm72_vm10 = vcmp.eq.s32.totalorder %v446_v6, %v440_v3  ;;  %v79_v22 = vadd.s32 %v76_v13, %v68_v15  ;;  %v167_v23 = vsel %vm164_vm9, 1, %v413_v8  ;;  %v49_v11 = vld [vmem:[#allocation5 + $0x8] sm:$0x7] }
  0x17   :  { %vm172_vm11 = vcmp.eq.s32.totalorder %v468_v17, %v47_v2  ;;  %v75_v25 = vsel %vm72_vm10, 1, %v413_v8  ;;  %vm183_vm12 = vcmp.eq.s32.totalorder %v475_v20, %v47_v2  ;;  %vm83_vm13 = vcmp.eq.s32.totalorder %v449_v7, %v440_v3 }
  0x18   :  { %v175_v26 = vsel %vm172_vm11, 1, %v413_v8  ;;  %v78_v28 = vadd.s32 %v75_v25, %v67_v21  ;;  %v90_v29 = vadd.s32 %v87_v16, %v79_v22  ;;  %v186_v31 = vsel %vm183_vm12, 1, %v413_v8 }
  0x19   :  { %v178_v30 = vadd.s32 %v175_v26, %v167_v23  ;;  %vm194_vm14 = vcmp.eq.s32.totalorder %v481_v24, %v47_v2  ;;  %vm205_vm15 = vcmp.eq.s32.totalorder %v486_v27, %v47_v2  ;;  %v86_v33 = vsel %vm83_vm13, 1, %v413_v8 }
  0x1a   :  { %v197_v32 = vsel %vm194_vm14, 1, %v413_v8  ;;  %vm94_vm0 = vcmp.eq.s32.totalorder %v456_v10, %v440_v3  ;;  %v101_v34 = vadd.s32 %v98_v19, %v90_v29  ;;  %v208_v36 = vsel %vm205_vm15, 1, %v413_v8 }
  0x1b   :  { %v189_v35 = vadd.s32 %v186_v31, %v178_v30  ;;  %v89_v37 = vadd.s32 %v86_v33, %v78_v28  ;;  %v97_v38 = vsel %vm94_vm0, 1, %v413_v8  ;;  %vm163_vm1 = vcmp.eq.s32.totalorder %v462_v14, %v440_v3 }
  0x1c   :  { %vm171_vm2 = vcmp.eq.s32.totalorder %v468_v17, %v440_v3  ;;  %vm182_vm3 = vcmp.eq.s32.totalorder %v475_v20, %v440_v3  ;;  %v104_v39 = vcvt.s32.f32 %v101_v34  ;;  %v166_v42 = vsel %vm163_vm1, 1, %v413_v8 }
  0x1d   :  { %v200_v40 = vadd.s32 %v197_v32, %v189_v35  ;;  %v100_v41 = vadd.s32 %v97_v38, %v89_v37  ;;  %v174_v43 = vsel %vm171_vm2, 1, %v413_v8  ;;  %v185_v44 = vsel %vm182_vm3, 1, %v413_v8 }
  0x1e   :  { %vm193_vm4 = vcmp.eq.s32.totalorder %v481_v24, %v440_v3  ;;  %vm204_vm6 = vcmp.eq.s32.totalorder %v486_v27, %v440_v3  ;;  %305 = vmatpush.msk.msra.mxu2 %vm112_vm5, %v104_v39  ;;  %v177_v47 = vadd.s32 %v174_v43, %v166_v42  ;;  %299 = vmatpush.msk.msra.mxu0 %vm112_vm5, %v104_v39  ;;  %v96_v61 = vsel %vm93_vm8, 1, %v413_v8 }
  0x1f   :  { %v211_v45 = vadd.s32 %v208_v36, %v200_v40  ;;  %v103_v46 = vcvt.s32.f32 %v100_v41  ;;  %v196_v48 = vsel %vm193_vm4, 1, %v413_v8  ;;  %v207_v49 = vsel %vm204_vm6, 1, %v413_v8 }
  0x20   :  { %vm60_vm7 = vcmp.eq.s32.totalorder %v444_v5, %v436_v1  ;;  %vm71_vm9 = vcmp.eq.s32.totalorder %v446_v6, %v436_v1  ;;  %v188_v52 = vadd.s32 %v185_v44, %v177_v47  ;;  %vm82_vm10 = vcmp.eq.s32.totalorder %v449_v7, %v436_v1 }
  0x21   :  { %v214_v51 = vcvt.s32.f32 %v211_v45  ;;  %306 = vmatpush.msra.mxu2 %v103_v46  ;;  %v63_v53 = vsel %vm60_vm7, 1, %v413_v8  ;;  %v74_v54 = vsel %vm71_vm9, 1, %v413_v8  ;;  %130 = vmatpush.msra.mxu0 %v103_v46  ;;  %vm162_vm11 = vcmp.eq.s32.totalorder %v462_v14, %v436_v1 }
  0x22   :  { %v66_v55 = vadd.s32 %v63_v53, %v55_v50  ;;  %v199_v56 = vadd.s32 %v196_v48, %v188_v52  ;;  %v85_v57 = vsel %vm82_vm10, 1, %v413_v8  ;;  %v165_v58 = vsel %vm162_vm11, 1, %v413_v8 }
  0x23   :  { %308 = vmatpush.msk.msra.mxu3 %vm112_vm5, %v214_v51  ;;  %302 = vmatpush.msk.msra.mxu1 %vm112_vm5, %v214_v51  ;;  %vm170_vm12 = vcmp.eq.s32.totalorder %v468_v17, %v436_v1  ;;  %vm181_vm13 = vcmp.eq.s32.totalorder %v475_v20, %v436_v1  ;;  %vm192_vm14 = vcmp.eq.s32.totalorder %v481_v24, %v436_v1  ;;  %vm105_vm15 = vcmask 162816  }
  0x24   :  { %v77_v59 = vadd.s32 %v74_v54, %v66_v55  ;;  %v210_v60 = vadd.s32 %v207_v49, %v199_v56  ;;  %v173_v62 = vsel %vm170_vm12, 1, %v413_v8  ;;  %v184_v63 = vsel %vm181_vm13, 1, %v413_v8 }
  0x25   :  { %v176_v2 = vadd.s32 %v173_v62, %v165_v58  ;;  %vm203_vm5 = vcmp.eq.s32.totalorder %v486_v27, %v436_v1  ;;  %v195_v4 = vsel %vm192_vm14, 1, %v413_v8  ;;  %vm143_vm0 = vcmask 1046528  }
  0x26   :  { %v88_v0 = vadd.s32 %v85_v57, %v77_v59  ;;  %v213_v3 = vcvt.s32.f32 %v210_v60  ;;  %v206_v7 = vsel %vm203_vm5, 1, %v413_v8  ;;  %vm149_vm1 = vcmask 1041408  }
  0x27   :  { %v187_v6 = vadd.s32 %v184_v63, %v176_v2 }
  0x28   :  { %v99_v5 = vadd.s32 %v96_v61, %v88_v0  ;;  %309 = vmatpush.msra.mxu3 %v213_v3  ;;  %232 = vmatpush.msra.mxu1 %v213_v3 }
  0x29   :  { %v198_v10 = vadd.s32 %v195_v4, %v187_v6 }
  0x2a   :  { %v102_v9 = vcvt.s32.f32 %v99_v5 }
  0x2b   :  { %v209_v13 = vadd.s32 %v206_v7, %v198_v10 }
  0x2c   :  { %307 = vmatpush.msra.mxu2 %v102_v9  ;;  %131 = vmatpush.msra.mxu0 %v102_v9 }
  0x2d   :  { %301 = vmatmul.msk.f32.vlgmr.msra.gmra.mxu2 %vm105_vm15, %v49_v11  ;;  %300 = vmatmul.msk.f32.vlgmr.msra.gmra.mxu0 %vm105_vm15, %v48_v12  ;;  %v212_v1 = vcvt.s32.f32 %v209_v13 }
  0x2f   :  { %310 = vmatpush.msra.mxu3 %v212_v1  ;;  %233 = vmatpush.msra.mxu1 %v212_v1 }
  0x30   :  { %304 = vmatmul.msk.f32.vlgmr.msra.gmra.mxu3 %vm105_vm15, %v49_v11  ;;  %303 = vmatmul.msk.f32.vlgmr.msra.gmra.mxu1 %vm105_vm15, %v48_v12 }
  0xaa   :  { %v133_v14 = vpop.f32.mrf.mxu0 }
  0xab   :  { %v139_v15 = vmul.f32 %v133_v14, %v133_v14 }
  0xad   :  { %v235_v16 = vpop.f32.mrf.mxu1  ;;  %v144_v17 = vrot.slane %v139_v15, 1 }
  0xae   :  { %v241_v19 = vmul.f32 %v235_v16, %v235_v16 }
  0xb0   :  { %v136_v8 = vpop.f32.mrf.mxu2  ;;  %v245_v24 = vrot.slane %v241_v19, 1 }
  0xb1   :  { %v140_v18 = vmul.f32 %v136_v8, %v136_v8 }
  0xb3   :  { %v145_v20 = vrot.slane %v140_v18, 1  ;;  %v238_v21 = vpop.f32.mrf.mxu3 }
  0xb4   :  { %v242_v25 = vmul.f32 %v238_v21, %v238_v21 }
  0xb5   :  { %v146_v22 = vsel %vm143_vm0, %v144_v17, %v145_v20  ;;  %v150_v23 = vsel %vm149_vm1, %v145_v20, 0.0 }
  0xb6   :  { %v151_v26 = vadd.f32 %v150_v23, %v146_v22  ;;  %v246_v27 = vrot.slane %v242_v25, 1 }
  0xb8   :  { %v152_v28 = vrot.slane %v151_v26, 4  ;;  %v247_v29 = vsel %vm143_vm0, %v245_v24, %v246_v27  ;;  %v250_v30 = vsel %vm149_vm1, %v246_v27, 0.0 }
  0xb9   :  { %v251_v32 = vadd.f32 %v250_v30, %v247_v29 }
  0xba   :  { %v153_v31 = vadd.f32 %v152_v28, %v151_v26 }
  0xbb   :  { %v252_v34 = vrot.slane %v251_v32, 4 }
  0xbc   :  { %v154_v33 = vrot.slane %v153_v31, 2 }
  0xbd   :  { %v253_v36 = vadd.f32 %v252_v34, %v251_v32 }
  0xbe   :  { %v155_v35 = vadd.f32 %v154_v33, %v153_v31 }
  0xbf   :  { %v254_v38 = vrot.slane %v253_v36, 2 }
  0xc0   :  { %v156_v37 = vrot.slane %v155_v35, 1 }
  0xc1   :  { %v255_v40 = vadd.f32 %v254_v38, %v253_v36 }
  0xc2   :  { %v157_v39 = vadd.f32 %v156_v37, %v155_v35 }
  0xc3   :  { %v256_v42 = vrot.slane %v255_v40, 1 }
  0xc4   :  { %v158_v41 = vmul.f32 0.5, %v157_v39 }
  0xc5   :  { %v257_v43 = vadd.f32 %v256_v42, %v255_v40 }
  0xc6   :  { %v159_v44 = vadd.f32 %v158_v41, %v133_v14 }
  0xc7   :  { %v258_v45 = vmul.f32 0.5, %v257_v43 }
  0xc9   :  { %v259_v46 = vadd.f32 %v258_v45, %v235_v16 }
  0xcb   :  { %v260_v47 = vsub.f32 %v159_v44, %v259_v46 }
  0xcd   :  { %v261_v48 = vsub.f32 0.0, %v260_v47 }
  0xcf   :  { %v262_v49 = vmul.f32 1.442695, %v261_v48 }
  0xd1   :  { %327 = vpow2.f32 %v262_v49 }
  0xd7   :  { %v328_v50 = vpop.eup %327 }
  0xd8   :  { %v264_v51 = vadd.f32 1.0, %v328_v50 }
  0xda   :  { %329 = vrcp.f32 %v264_v51  ;;  %v276_v55 = vand.u32 2147483648, %v264_v51  ;;  %v274_v57 = vand.u32 2147483647, %v264_v51  ;;  %vm270_vm3 = vweird.f32 %v264_v51 }
  0xdc   :  { %v277_v59 = vor.u32 1.1754944e-38, %v276_v55  ;;  %vm275_vm6 = vcmp.eq.f32.partialorder %v274_v57, 8.507059e+37 }
  0xe0   :  { %v330_v52 = vpop.eup %329 }
  0xe1   :  { %v266_v53 = vmul.f32 %v330_v52, %v264_v51  ;;  %vm271_vm2 = vweird.f32 %v330_v52 }
  0xe2   :  { %vm272_vm4 = vmor %vm270_vm3, %vm271_vm2 }
  0xe3   :  { %v267_v54 = vsub.f32 1.0, %v266_v53 }
  0xe5   :  { %v268_v56 = vmul.f32 %v330_v52, %v267_v54 }
  0xe7   :  { %v269_v58 = vadd.f32 %v330_v52, %v268_v56 }
  0xe9   :  { %v273_v60 = vsel %vm272_vm4, %v330_v52, %v269_v58 }
  0xea   :  { %v278_v61 = vsel %vm275_vm6, %v277_v59, %v273_v60 }
  0xeb   :  { %280 = vst [vmem:[#allocation7] sm:$0x1] %v278_v61 }
  0xec   :  { %291 = dma.vmem_to_hbm [thread:$0]  %s287_s1, 16, %s289_s23, [#allocation4]  }
  0xed   :  { %407 = dma.done.wait [#allocation4], 16  }
  0xee   :  { %408 = vsyncadd [#allocation4], 4294967280 }
  0xef   :  { %296 = vsyncpa [#allocation3], 1 }
  0xf0   :  { %297 = vsyncpa [#allocation6], 1 }
  0xf1   :  { %298 = vsyncpa [#allocation4], 1 }

</bundles_post_ra>
